<compile_context>
chip_gen: v7x
topology: tpu7x:2x2x1
jax: 0.10.0
libtpu: 0.0.40
codegen_flags: <defaults>
</compile_context>

<pallas_src>
import jax
import jax.numpy as jnp
from jax.experimental import pallas as pl
from jax.experimental.pallas import tpu as pltpu

APPLY_MASK = True
MXU_DTYPE = jnp.bfloat16   # set to jnp.float32 for full-precision MXU traffic


def attention_kernel(out_ref, ctx_ref, bias_ref, w_in_ref, w_out_ref, b_out_ref,
                     o_ref, attn_ref):
    # Per-grid-step shapes (BLOCK_B batch elements):
    #   out_ref  : (Bb, T_out, Hd)   MXU_DTYPE
    #   ctx_ref  : (Bb, T_in, He2)   MXU_DTYPE
    #   bias_ref : (Bb, 1, T_in)     f32   additive mask bias (0 / -1e6)
    #   w_in_ref : (Hd, He2)         MXU_DTYPE  (torch linear_in.weight layout)
    #   w_out_ref: (He2 + Hd, Hd)    MXU_DTYPE
    #   b_out_ref: (1, Hd)           f32
    #   o_ref    : (Bb, T_out, Hd)   f32
    #   attn_ref : (Bb, T_out, T_in) f32
    Bb, T_out, Hd = out_ref.shape
    _, T_in, He2 = ctx_ref.shape
    mx = ctx_ref.dtype

    out_mx = out_ref[...]                       # (Bb, T_out, Hd)
    ctx_mx = ctx_ref[...]                       # (Bb, T_in, He2)
    out_rows = out_mx.reshape(Bb * T_out, Hd)   # batch-folded rows

    # q = output @ linear_in.weight  (== output @ W_in^T @ ...) folded over
    # batch rows into one (Bb*T_out, Hd) x (Hd, He2) MXU matmul.
    q = jnp.dot(out_rows, w_in_ref[...],
                preferred_element_type=jnp.float32)          # (Bb*T_out, He2) f32
    q_mx = q.astype(mx).reshape(Bb, T_out, He2)

    # scores[b,t,i] = sum_e q[b,t,e] * ctx[b,i,e]  -- contraction on the last
    # dims of both operands: no transpose, no XLU vxpose.
    scores = jnp.einsum("bte,bie->bti", q_mx, ctx_mx,
                        preferred_element_type=jnp.float32)  # (Bb, T_out, T_in)

    # Additive mask bias (precomputed f32 in the wrapper): no int compare/select.
    scores = scores + bias_ref[...]

    # Softmax over T_in (dim=2 in the torch code); reciprocal on the EUP.
    m = jnp.max(scores, axis=-1, keepdims=True)
    e = jnp.exp(scores - m)
    denom = jnp.sum(e, axis=-1, keepdims=True)
    attn = e * pl.reciprocal(denom, approx=True)
    attn_ref[...] = attn                                     # Decoder returns attn

    # Weighted context: (Bb, T_out, T_in) x (Bb, T_in, He2) -> (Bb, T_out, He2)
    wctx = jnp.einsum("bti,bie->bte", attn.astype(mx), ctx_mx,
                      preferred_element_type=jnp.float32)

    # linear_out(concat([wctx, output], -1)) + bias as a split, batch-folded
    # matmul: [wctx | output] @ W_out  (avoids an in-kernel concatenate).
    wctx_rows = wctx.reshape(Bb * T_out, He2).astype(mx)
    pre = (jnp.dot(wctx_rows, w_out_ref[:He2, :],
                   preferred_element_type=jnp.float32)
           + jnp.dot(out_rows, w_out_ref[He2:, :],
                     preferred_element_type=jnp.float32)
           + b_out_ref[...])
    o_ref[...] = jnp.tanh(pre).reshape(Bb, T_out, Hd)


def attention_forward(output, context, mask, w_in, w_out, b_out,
                      *, block_b=None, apply_mask=APPLY_MASK):
    B, T_out, Hd = output.shape
    _, T_in, He2 = context.shape

    if block_b is None:
        # Fold batch, but keep >= 2 parallel grid steps so both v7x TensorCores
        # get work; for realistic sizes also cap block_b against VMEM
        # (context block = block_b*T_in*He2*2B, double-buffered; v7x has only
        # 64 MiB physical VMEM -> bias toward smaller block_b there, and set
        # pltpu.CompilerParams(vmem_limit_bytes=...) explicitly).
        block_b = B // 2 if (B >= 2 and B % 2 == 0) else B
    assert B % block_b == 0, "block_b must divide B"

    # bf16 MXU operands (halves HBM/VMEM traffic); f32 accumulation in-kernel.
    out_mx = output.astype(MXU_DTYPE)
    ctx_mx = context.astype(MXU_DTYPE)
    w_in_mx = w_in.astype(MXU_DTYPE)
    w_out_mx = w_out.astype(MXU_DTYPE)

    # Precompute the additive mask bias in f32 (0 where keep, -1e6 where masked).
    if apply_mask:
        bias = jnp.where(mask == 0, jnp.float32(-1000000.0), jnp.float32(0.0))
    else:
        bias = jnp.zeros((B, T_in), jnp.float32)
    bias3 = bias.reshape(B, 1, T_in)
    b_out2 = b_out.reshape(1, Hd).astype(jnp.float32)

    grid = (B // block_b,)
    out, attn = pl.pallas_call(
        attention_kernel,
        out_shape=(
            jax.ShapeDtypeStruct((B, T_out, Hd), jnp.float32),
            jax.ShapeDtypeStruct((B, T_out, T_in), jnp.float32),
        ),
        grid=grid,
        in_specs=[
            pl.BlockSpec((block_b, T_out, Hd), lambda b: (b, 0, 0)),   # output
            pl.BlockSpec((block_b, T_in, He2), lambda b: (b, 0, 0)),   # context
            pl.BlockSpec((block_b, 1, T_in), lambda b: (b, 0, 0)),     # mask bias
            pl.BlockSpec((Hd, He2), lambda b: (0, 0)),                 # W_in (torch layout)
            pl.BlockSpec((He2 + Hd, Hd), lambda b: (0, 0)),            # W_out
            pl.BlockSpec((1, Hd), lambda b: (0, 0)),                   # b_out
        ],
        out_specs=(
            pl.BlockSpec((block_b, T_out, Hd), lambda b: (b, 0, 0)),
            pl.BlockSpec((block_b, T_out, T_in), lambda b: (b, 0, 0)),
        ),
        compiler_params=pltpu.CompilerParams(
            dimension_semantics=("parallel",)),
    )(out_mx, ctx_mx, bias3, w_in_mx, w_out_mx, b_out2)
    return out, attn


def reference_forward_f32(output, context, mask, w_in, w_out, b_out,
                          apply_mask=APPLY_MASK):
    """Pure-f32 reference with the module's intended semantics."""
    ctx_in = jnp.einsum("bie,de->bid", context, w_in)            # linear_in
    attn = jnp.einsum("btd,bid->bti", output, ctx_in)            # bmm
    if apply_mask:
        attn = jnp.where(mask[:, None, :] == 0, -1000000.0, attn)
    attn = jax.nn.softmax(attn, axis=-1)
    wctx = jnp.einsum("bti,bie->bte", attn, context)
    cat = jnp.concatenate([wctx, output], axis=-1)
    out = jnp.tanh(cat @ w_out + b_out[None, None, :])
    return out, attn


def reference_forward_mxu(output, context, mask, w_in, w_out, b_out,
                          apply_mask=APPLY_MASK):
    """Reference that mirrors the kernel's bf16-MXU / f32-accumulate casts."""
    mx = MXU_DTYPE
    out_mx = output.astype(mx)
    ctx_mx = context.astype(mx)
    w_in_mx = w_in.astype(mx)
    w_out_mx = w_out.astype(mx)
    He2 = context.shape[-1]

    q = jnp.einsum("btd,de->bte", out_mx, w_in_mx,
                   preferred_element_type=jnp.float32)
    scores = jnp.einsum("bte,bie->bti", q.astype(mx), ctx_mx,
                        preferred_element_type=jnp.float32)
    if apply_mask:
        bias = jnp.where(mask == 0, jnp.float32(-1000000.0), jnp.float32(0.0))
        scores = scores + bias[:, None, :]
    attn = jax.nn.softmax(scores, axis=-1)
    wctx = jnp.einsum("bti,bie->bte", attn.astype(mx), ctx_mx,
                      preferred_element_type=jnp.float32)
    pre = (jnp.einsum("bte,ed->btd", wctx.astype(mx), w_out_mx[:He2],
                      preferred_element_type=jnp.float32)
           + jnp.einsum("btd,dk->btk", out_mx, w_out_mx[He2:],
                        preferred_element_type=jnp.float32)
           + b_out[None, None, :])
    return jnp.tanh(pre), attn


if __name__ == "__main__":
    # TPU-friendly small shapes: He2, Hd, T_in are 128-multiples so every
    # stored last dim is lane-dense (no masked partial stores); T_out matches
    # the 8-sublane tile.  (Module uses hidden=100; 128 is the aligned analog.)
    enc_hidden = 64
    dec_hidden = 128
    B, T_out, T_in = 8, 8, 128
    He2 = 2 * enc_hidden
    BLOCK_B = 4                      # grid = (2,) parallel -> both v7x TCs busy

    key = jax.random.PRNGKey(0)
    k1, k2, k3, k4, k5, k6 = jax.random.split(key, 6)

    # Deterministic parameter init (PyTorch-Linear-style uniform bounds).
    bound_in = 1.0 / (He2 ** 0.5)
    bound_out = 1.0 / ((He2 + dec_hidden) ** 0.5)
    w_in = jax.random.uniform(k1, (dec_hidden, He2), jnp.float32,
                              -bound_in, bound_in)        # torch layout (Hd, He2)
    w_out = jax.random.uniform(k2, (He2 + dec_hidden, dec_hidden), jnp.float32,
                               -bound_out, bound_out)
    b_out = jax.random.uniform(k3, (dec_hidden,), jnp.float32,
                               -bound_out, bound_out)

    # Inputs: decoder GRU states (tanh-bounded -> modest scale), encoder
    # context, and a padding mask derived like Decoder.create_mask (src != 1).
    output = 0.5 * jax.random.normal(k4, (B, T_out, dec_hidden), jnp.float32)
    context = 0.5 * jax.random.normal(k5, (B, T_in, He2), jnp.float32)
    src = jax.random.randint(k6, (B, T_in), 2, 50)
    pad_len = T_in // 4
    src = src.at[B // 2:, T_in - pad_len:].set(1)          # PAD token == 1
    mask = (src != 1).astype(jnp.int32)

    out, attn = attention_forward(output, context, mask, w_in, w_out, b_out,
                                  block_b=BLOCK_B)
    jax.block_until_ready((out, attn))

    assert out.shape == (B, T_out, dec_hidden)
    assert attn.shape == (B, T_out, T_in)

    # Tight check against a reference with identical bf16-MXU casts.
    ref_out, ref_attn = reference_forward_mxu(output, context, mask,
                                              w_in, w_out, b_out)
    assert jnp.allclose(out, ref_out, atol=5e-3, rtol=5e-3)
    assert jnp.allclose(attn, ref_attn, atol=5e-3, rtol=5e-3)

    # Loose sanity check against the pure-f32 module semantics (bf16 MXU
    # operands cost a few 1e-2 of absolute accuracy at most at these scales).
    ref_out32, ref_attn32 = reference_forward_f32(output, context, mask,
                                                  w_in, w_out, b_out)
    assert jnp.allclose(out, ref_out32, atol=8e-2, rtol=8e-2)
    assert jnp.allclose(attn, ref_attn32, atol=8e-2, rtol=8e-2)

    print("KERNEL_OK")
</pallas_src>

<mosaic_0001>
module attributes {stable_mosaic.version = 11 : i64} {
  func.func @attention_kernel(%arg0: i32, %arg1: memref<4x8x128xbf16, #tpu.memory_space<vmem>>, %arg2: memref<4x128x128xbf16, #tpu.memory_space<vmem>>, %arg3: memref<4x1x128xf32, #tpu.memory_space<vmem>>, %arg4: memref<128x128xbf16, #tpu.memory_space<vmem>>, %arg5: memref<256x128xbf16, #tpu.memory_space<vmem>>, %arg6: memref<1x128xf32, #tpu.memory_space<vmem>>, %arg7: memref<4x8x128xf32, #tpu.memory_space<vmem>>, %arg8: memref<4x8x128xf32, #tpu.memory_space<vmem>>) attributes {dimension_semantics = [#tpu.dimension_semantics<parallel>], iteration_bounds = array<i64: 2>, scalar_prefetch = 0 : i64, scratch_operands = 0 : i64, tpu.core_type = #tpu.core_type<tc>, window_params = [{transform_indices = @transform_0, window_bounds = array<i64: 4, 8, 128>}, {transform_indices = @transform_1, window_bounds = array<i64: 4, 128, 128>}, {transform_indices = @transform_2, window_bounds = array<i64: 4, 1, 128>}, {pipeline_mode = #tpu.pipeline_mode<synchronous>, transform_indices = @transform_3, window_bounds = array<i64: 128, 128>}, {pipeline_mode = #tpu.pipeline_mode<synchronous>, transform_indices = @transform_4, window_bounds = array<i64: 256, 128>}, {pipeline_mode = #tpu.pipeline_mode<synchronous>, transform_indices = @transform_5, window_bounds = array<i64: 1, 128>}, {transform_indices = @transform_6, window_bounds = array<i64: 4, 8, 128>}, {transform_indices = @transform_7, window_bounds = array<i64: 4, 8, 128>}]} {
    %c0 = arith.constant 0 : index
    %c0_0 = arith.constant 0 : index
    %c0_1 = arith.constant 0 : index
    %0 = vector.load %arg1[%c0, %c0_0, %c0_1] : memref<4x8x128xbf16, #tpu.memory_space<vmem>>, vector<4x8x128xbf16>
    %c0_2 = arith.constant 0 : index
    %c0_3 = arith.constant 0 : index
    %c0_4 = arith.constant 0 : index
    %1 = vector.load %arg2[%c0_2, %c0_3, %c0_4] : memref<4x128x128xbf16, #tpu.memory_space<vmem>>, vector<4x128x128xbf16>
    %2 = vector.shape_cast %0 : vector<4x8x128xbf16> to vector<32x128xbf16>
    %c0_5 = arith.constant 0 : index
    %c0_6 = arith.constant 0 : index
    %3 = vector.load %arg4[%c0_5, %c0_6] : memref<128x128xbf16, #tpu.memory_space<vmem>>, vector<128x128xbf16>
    %cst = arith.constant dense<0.000000e+00> : vector<32x128xf32>
    %4 = tpu.matmul %2, %3, %cst {dimension_numbers = #tpu.dot_dimension_numbers<[1], [0], [0], [1], [0, 0, 1, 1], [], []>} : vector<32x128xbf16>, vector<128x128xbf16>, vector<32x128xf32> -> vector<32x128xf32>
    %5 = arith.truncf %4 : vector<32x128xf32> to vector<32x128xbf16>
    %6 = vector.shape_cast %5 : vector<32x128xbf16> to vector<4x8x128xbf16>
    "tpu.trace_start"() <{level = 10 : i32, message = "bte,bie->bti"}> : () -> ()
    %cst_7 = arith.constant dense<0.000000e+00> : vector<4x8x128xf32>
    %7 = tpu.matmul %6, %1, %cst_7 {dimension_numbers = #tpu.dot_dimension_numbers<[2], [2], [1], [1], [0, 0, 0, 1, 1, 1], [0], [0]>} : vector<4x8x128xbf16>, vector<4x128x128xbf16>, vector<4x8x128xf32> -> vector<4x8x128xf32>
    "tpu.trace_stop"() : () -> ()
    %c0_8 = arith.constant 0 : index
    %c0_9 = arith.constant 0 : index
    %c0_10 = arith.constant 0 : index
    %8 = vector.load %arg3[%c0_8, %c0_9, %c0_10] : memref<4x1x128xf32, #tpu.memory_space<vmem>>, vector<4x1x128xf32>
    %9 = vector.broadcast %8 : vector<4x1x128xf32> to vector<4x8x128xf32>
    %10 = arith.addf %7, %9 : vector<4x8x128xf32>
    %cst_11 = arith.constant dense<0xFF800000> : vector<4x8xf32>
    %11 = vector.multi_reduction <maximumf>, %10, %cst_11 [2] : vector<4x8x128xf32> to vector<4x8xf32>
    %12 = vector.shape_cast %11 : vector<4x8xf32> to vector<4x8x1xf32>
    %13 = vector.broadcast %12 : vector<4x8x1xf32> to vector<4x8x128xf32>
    %14 = arith.subf %10, %13 : vector<4x8x128xf32>
    %15 = math.exp %14 : vector<4x8x128xf32>
    %cst_12 = arith.constant dense<0.000000e+00> : vector<4x8xf32>
    %16 = vector.multi_reduction <add>, %15, %cst_12 [2] : vector<4x8x128xf32> to vector<4x8xf32>
    %17 = vector.shape_cast %16 : vector<4x8xf32> to vector<4x8x1xf32>
    %18 = tpu.reciprocal %17 {approx = true} : vector<4x8x1xf32> -> vector<4x8x1xf32>
    %19 = vector.broadcast %18 : vector<4x8x1xf32> to vector<4x8x128xf32>
    %20 = arith.mulf %15, %19 : vector<4x8x128xf32>
    %c0_13 = arith.constant 0 : index
    %c0_14 = arith.constant 0 : index
    %c0_15 = arith.constant 0 : index
    %21 = vector.load %arg8[%c0_13, %c0_14, %c0_15] : memref<4x8x128xf32, #tpu.memory_space<vmem>>, vector<4x8x128xf32>
    tpu.vector_store %arg8[%c0_13, %c0_14, %c0_15], %20 {strides = array<i32>} : memref<4x8x128xf32, #tpu.memory_space<vmem>>, vector<4x8x128xf32>,
    %22 = arith.truncf %20 : vector<4x8x128xf32> to vector<4x8x128xbf16>
    "tpu.trace_start"() <{level = 10 : i32, message = "bti,bie->bte"}> : () -> ()
    %cst_16 = arith.constant dense<0.000000e+00> : vector<4x8x128xf32>
    %23 = tpu.matmul %22, %1, %cst_16 {dimension_numbers = #tpu.dot_dimension_numbers<[2], [1], [1], [2], [0, 0, 0, 1, 1, 2], [0], [0]>} : vector<4x8x128xbf16>, vector<4x128x128xbf16>, vector<4x8x128xf32> -> vector<4x8x128xf32>
    "tpu.trace_stop"() : () -> ()
    %24 = vector.shape_cast %23 : vector<4x8x128xf32> to vector<32x128xf32>
    %25 = arith.truncf %24 : vector<32x128xf32> to vector<32x128xbf16>
    %c0_17 = arith.constant 0 : index
    %c0_18 = arith.constant 0 : index
    %26 = vector.load %arg5[%c0_17, %c0_18] : memref<256x128xbf16, #tpu.memory_space<vmem>>, vector<128x128xbf16>
    %cst_19 = arith.constant dense<0.000000e+00> : vector<32x128xf32>
    %27 = tpu.matmul %25, %26, %cst_19 {dimension_numbers = #tpu.dot_dimension_numbers<[1], [0], [0], [1], [0, 0, 1, 1], [], []>} : vector<32x128xbf16>, vector<128x128xbf16>, vector<32x128xf32> -> vector<32x128xf32>
    %c128 = arith.constant 128 : index
    %c0_20 = arith.constant 0 : index
    %28 = vector.load %arg5[%c128, %c0_20] : memref<256x128xbf16, #tpu.memory_space<vmem>>, vector<128x128xbf16>
    %cst_21 = arith.constant dense<0.000000e+00> : vector<32x128xf32>
    %29 = tpu.matmul %2, %28, %cst_21 {dimension_numbers = #tpu.dot_dimension_numbers<[1], [0], [0], [1], [0, 0, 1, 1], [], []>} : vector<32x128xbf16>, vector<128x128xbf16>, vector<32x128xf32> -> vector<32x128xf32>
    %30 = arith.addf %27, %29 : vector<32x128xf32>
    %c0_22 = arith.constant 0 : index
    %c0_23 = arith.constant 0 : index
    %31 = vector.load %arg6[%c0_22, %c0_23] : memref<1x128xf32, #tpu.memory_space<vmem>>, vector<1x128xf32>
    %32 = vector.broadcast %31 : vector<1x128xf32> to vector<32x128xf32>
    %33 = arith.addf %30, %32 : vector<32x128xf32>
    %34 = math.tanh %33 : vector<32x128xf32>
    %35 = vector.shape_cast %34 : vector<32x128xf32> to vector<4x8x128xf32>
    %c0_24 = arith.constant 0 : index
    %c0_25 = arith.constant 0 : index
    %c0_26 = arith.constant 0 : index
    %36 = vector.load %arg7[%c0_24, %c0_25, %c0_26] : memref<4x8x128xf32, #tpu.memory_space<vmem>>, vector<4x8x128xf32>
    tpu.vector_store %arg7[%c0_24, %c0_25, %c0_26], %35 {strides = array<i32>} : memref<4x8x128xf32, #tpu.memory_space<vmem>>, vector<4x8x128xf32>,
    return
  }
  func.func @transform_0(%arg0: i32) -> (i32, i32, i32) {
    %c0_i32 = arith.constant 0 : i32
    %c0_i32_0 = arith.constant 0 : i32
    %c0_i32_1 = arith.constant 0 : i32
    return %arg0, %c0_i32, %c0_i32_0 : i32, i32, i32
  }
  func.func @transform_1(%arg0: i32) -> (i32, i32, i32) {
    %c0_i32 = arith.constant 0 : i32
    %c0_i32_0 = arith.constant 0 : i32
    %c0_i32_1 = arith.constant 0 : i32
    return %arg0, %c0_i32, %c0_i32_0 : i32, i32, i32
  }
  func.func @transform_2(%arg0: i32) -> (i32, i32, i32) {
    %c0_i32 = arith.constant 0 : i32
    %c0_i32_0 = arith.constant 0 : i32
    %c0_i32_1 = arith.constant 0 : i32
    return %arg0, %c0_i32, %c0_i32_0 : i32, i32, i32
  }
  func.func @transform_3(%arg0: i32) -> (i32, i32) {
    %c0_i32 = arith.constant 0 : i32
    %c0_i32_0 = arith.constant 0 : i32
    %c0_i32_1 = arith.constant 0 : i32
    return %c0_i32, %c0_i32_0 : i32, i32
  }
  func.func @transform_4(%arg0: i32) -> (i32, i32) {
    %c0_i32 = arith.constant 0 : i32
    %c0_i32_0 = arith.constant 0 : i32
    %c0_i32_1 = arith.constant 0 : i32
    return %c0_i32, %c0_i32_0 : i32, i32
  }
  func.func @transform_5(%arg0: i32) -> (i32, i32) {
    %c0_i32 = arith.constant 0 : i32
    %c0_i32_0 = arith.constant 0 : i32
    %c0_i32_1 = arith.constant 0 : i32
    return %c0_i32, %c0_i32_0 : i32, i32
  }
  func.func @transform_6(%arg0: i32) -> (i32, i32, i32) {
    %c0_i32 = arith.constant 0 : i32
    %c0_i32_0 = arith.constant 0 : i32
    %c0_i32_1 = arith.constant 0 : i32
    return %arg0, %c0_i32, %c0_i32_0 : i32, i32, i32
  }
  func.func @transform_7(%arg0: i32) -> (i32, i32, i32) {
    %c0_i32 = arith.constant 0 : i32
    %c0_i32_0 = arith.constant 0 : i32
    %c0_i32_1 = arith.constant 0 : i32
    return %arg0, %c0_i32, %c0_i32_0 : i32, i32, i32
  }
}

</mosaic_0001>

<bundles_post_ra>
// kernel: tpu_custom_call.1
= control target key start
LH: loop header
LB: loop body
LE: loop exit
PB: predicated region body
PF: predicated region fallthrough
CT: control target
= control target key end

     0   :  { %s3215_s0 = inlined_call_operand.hbm [shape: bf16[8,8,128], index: 0, kind: input, shape index: {}]   ;;  %s3216_s1 = inlined_call_operand.hbm [shape: bf16[8,128,128], index: 1, kind: input, shape index: {}]   ;;  %s3217_s2 = inlined_call_operand.hbm [shape: f32[8,1,128], index: 2, kind: input, shape index: {}]   ;;  %s3218_s3 = inlined_call_operand.hbm [shape: bf16[128,128], index: 3, kind: input, shape index: {}]   ;;  %s3219_s4 = inlined_call_operand.hbm [shape: bf16[256,128], index: 4, kind: input, shape index: {}]   ;;  %s3220_s5 = inlined_call_operand.vmem [shape: f32[1,128], index: 5, kind: input, shape index: {}]   ;;  %s3221_s6 = inlined_call_operand.hbm [shape: f32[8,8,128], index: 6, kind: output, shape index: {0}]   ;;  %s3222_s7 = inlined_call_operand.hbm [shape: f32[8,8,128], index: 7, kind: output, shape index: {1}]  }
   0x1   :  { %3241 = sst [smem:[#allocation24_spill]] %s3216_s1 }
   0x2   :  { %3242 = sst [smem:[#allocation25_spill]] %s3218_s3 }
   0x3   :  { %13 = vsyncpa [#allocation3], 0 }
   0x4   :  { %15 = vsyncpa [#allocation3 + $0x1], 0 }
   0x5   :  { %16 = vsyncpa [#allocation6], 0 }
   0x6   :  { %18 = vsyncpa [#allocation6 + $0x1], 0 }
   0x7   :  { %19 = vsyncpa [#allocation9], 0 }
   0x8   :  { %20 = vsyncpa [#allocation4], 0 }
   0x9   :  { %22 = vsyncpa [#allocation4 + $0x1], 0 }
   0xa   :  { %23 = vsyncpa [#allocation13], 0 }
   0xb   :  { %25 = vsyncpa [#allocation13 + $0x1], 0  ;;  %s2578_s24 = smov 0   ;;  %s2580_s25 = smov 0  }
   0xc   :  { %s2582_s26 = smov 0   ;;  %s2584_s27 = smov 0  }
   0xd LB: > { %3243 = sst [smem:[#allocation19_spill]] %s2509_s24  ;;  %s2599_s28 = sadd.s32 4294967295, %s2521_s27   ;;  %s2521_s27 = sphi %s2584_s27, %s3275_s27   ;;  %s2517_s26 = sphi %s2582_s26, %s3277_s26   ;;  %s2513_s25 = sphi %s2580_s25, %s3279_s25   ;;  %s2509_s24 = sphi %s2578_s24, %s3278_s24  }
   0xe   : > { %3244 = sst [smem:[#allocation20_spill]] %s2517_s26  ;;  %s1663_s29 = sadd.s32 4294967294, %s2521_s27  }
   0xf   : > { %s2603_s30 = sadd.s32 1, %s2521_s27   ;;  %s38_s8 = sadd.s32 1, %s2517_s26 }
  0x10   : > { %3245 = sst [smem:[#allocation21_spill]] %s2603_s30  ;;  %s35_s9 = ssub.s32 %s2521_s27, %s2603_s30 }
  0x11   : > { %p45_p0 = scmp.ne.s32.totalorder %s2517_s26, %s2513_s25  ;;  %p36_p1 = scmp.eq.s32.totalorder %s35_s9, 0 }
  0x12   : > { %p46_p2 = scmp.eq.s32.totalorder %s2521_s27, 0  ;;  %p51_p3 = scmp.ne.s32.totalorder %s2513_s25, %s2509_s24 }
  0x13   : > { %p3223_p4 = scmp.eq.s32.totalorder %s2599_s28, 0  ;;  %p190_p7 = scmp.eq.s32.totalorder %s2599_s28, 1 }
  0x14   : > { %s2615_s10 = scalar_select %p36_p1, %s2517_s26, %s38_s8  }
  0x15   : > { %p2617_p5 = por %p46_p2, %p45_p0  ;;  %p2623_p6 = por %p3223_p4, %p51_p3 }
  0x16   : > { %3246 = sst [smem:[#allocation22_spill]] %s2615_s10  ;;  %p196_p8 = scmp.eq.s32.totalorder %s1663_s29, 1 }
  0x17   : > { %s3247_s11 = scalar_select %p2617_p5, 1, 0 }
  0x18   : > { %s3248_s12 = scalar_select %p2623_p6, 1, 0 }
  0x19   : > { %p1664_p9 = scmp.ge.s32.totalorder %s2521_s27, 1  ;;  %p229_p10 = scmp.lt.s32.totalorder %s2521_s27, 3 }
  0x1a   : > { %p2630_p11 = por %p190_p7, %p45_p0  ;;  %p2634_p12 = por %p196_p8, %p51_p3 }
  0x1b   : > { %p2638_p13 = pnand %p1664_p9, %p229_p10  ;;  %s2523_s16 = smov [#allocation8]  }
  0x1c   : > { %s3249_s13 = scalar_select %p2630_p11, 1, 0 }
  0x1d   : > { %s3250_s14 = scalar_select %p2634_p12, 1, 0 }
  0x1e   : > { %s3252_s15 = scalar_select %p2638_p13, 1, 0 }
  0x1f   : > { %3251 = sst [smem:[#allocation23_spill]] %s3250_s14  ;;  %p2115_p1 = pneg %p2638_p13 }
  0x20   : > { %s241_s17 = sshll.u32 %s2523_s16, 4  ;;  %s2653_s19 = sand.u32 1, %s2517_s26   ;;  %s242_s17 = int_to_ptr.vmem [resolvable:$true] %s241_s17 }
  0x21   : > { %p2646_p2 = pnand %p2115_p1, %p3223_p4  ;;  %s292_s20 = sand.u32 1, %s2521_s27  }
  0x22   : > { %s3254_s3 = sld [smem:[#allocation25_spill]] }
  0x23   : > { %s3253_s18 = scalar_select %p2646_p2, 1, 0 }
  0x24   : > { %p3232_p8 = pneg %p2646_p2 }
  0x28   : > { %s2269_s23 = scalar_lea.hbm %s3254_s3, 1024 }
  0x29   : > { %p2270_p7 = scmp.ne.s32.totalorder %s3254_s3, %s2269_s23  ;;  %p2276_p1 = scmp.lt.u32.totalorder %s2269_s23, %s3254_s3 }
  0x2b   : > { %p2272_p9 = pnand %p3232_p8, %p2270_p7 }
  0x2d   : > { %p2273_p10 = pneg %p2272_p9 }
  0x2f   : > { %p2278_p0 = pnand %p2276_p1, %p2273_p10 }
  0x31   : > { %2281 = shalt.err (!%p2278_p0)
}
  0x32   : > { %s2282_s10 = scalar_lea.vmem %s242_s17, 1024  ;;  %p2290_p11 = scmp.lt.s32.totalorder %s242_s17, %s242_s17 }
  0x33   : > { %p2283_p4 = scmp.ne.s32.totalorder %s242_s17, %s2282_s10  ;;  %p2291_p6 = scmp.lt.s32.totalorder %s2282_s10, %s2282_s10 }
  0x35   : > { %p2285_p3 = pnand %p2283_p4, %p3232_p8  ;;  %p2292_p13 = por %p2291_p6, %p2290_p11 }
  0x37   : > { %p2286_p12 = pneg %p2285_p3 }
  0x39   : > { %p2293_p5 = pnand %p2292_p13, %p2286_p12 }
  0x3b   : > { %2296 = shalt.err (!%p2293_p5)
}
  0x3c   : > { %s3230_s21 = smov 64   ;;  %s2525_s22 = smov 4  }
  0x3d   : > { %2118 = dma.hbm_to_vmem [thread:$0]  (!%p2646_p2), %s3254_s3, 1024, %s242_s17, [#allocation9], %s3230_s21, %s3230_s21, %s2525_s22  }
  0x3e   : > { %p3255_p4 = scmp.ne.s32.totalorder %s3247_s11, 0  ;;  %p3256_p0 = scmp.lt.s32.totalorder %s2521_s27, 2 }
  0x3f   : > { %s1671_s8 = sshll.u32 %s2653_s19, 8  ;;  %s1763_s9 = sshll.u32 %s2521_s27, 12 }
  0x40   : > { %p2685_p6 = pnand %p3256_p0, %p3255_p4  ;;  %s3258_s1 = sld [smem:[#allocation24_spill]] }
  0x41   : > { %s296_s23 = scalar_lea.vmem [#allocation5], %s1671_s8  ;;  %s2698_s11 = scalar_lea.sflag [#allocation6], %s292_s20 }
  0x42   : > { %s3257_s10 = scalar_select %p2685_p6, 1, 0 }
  0x43   : > { %s304_s17 = sshll.u32 %s296_s23, 4  ;;  %p2704_p11 = pneg %p2685_p6  ;;  %s2696_s17 = int_to_ptr.vmem [resolvable:$true] %s304_s17 }
  0x45   : > { %s3259_s21 = scalar_select %p2704_p11, 1, 0 }
  0x46   : > { %s2694_s30 = scalar_lea.hbm %s3258_s1, %s1763_s9  ;;  %s2302_s8 = scalar_lea.hbm %s3258_s1, 8192 }
  0x47   : > { %s2297_s29 = scalar_lea.hbm %s2694_s30, 4096  ;;  %p2303_p3 = scmp.lt.u32.totalorder %s2694_s30, %s3258_s1 }
  0x48   : > { %p2298_p5 = scmp.ne.s32.totalorder %s2694_s30, %s2297_s29  ;;  %p2304_p7 = scmp.lt.u32.totalorder %s2302_s8, %s2297_s29 }
  0x49   : > { %p2306_p10 = scmp.lt.u32.totalorder %s2297_s29, %s2694_s30 }
  0x4a   : > { %p2300_p12 = pnand %p2704_p11, %p2298_p5  ;;  %p2305_p9 = por %p2304_p7, %p2303_p3 }
  0x4c   : > { %p2301_p13 = pneg %p2300_p12  ;;  %p2307_p1 = por %p2306_p10, %p2305_p9 }
  0x4e   : > { %p2308_p4 = pnand %p2307_p1, %p2301_p13 }
  0x50   : > { %2311 = shalt.err (!%p2308_p4)
}
  0x51   : > { %s2312_s20 = scalar_lea.vmem %s2696_s17, 4096  ;;  %s2526_s26 = smov [#allocation5]  }
  0x52   : > { %p2313_p0 = scmp.ne.s32.totalorder %s2696_s17, %s2312_s20  ;;  %s2317_s9 = sshll.u32 %s2526_s26, 4  ;;  %s2318_s9 = int_to_ptr.vmem [resolvable:$false] %s2317_s9 }
  0x53   : > { %s2319_s16 = scalar_lea.vmem %s2318_s9, 8192  ;;  %p2320_p8 = scmp.lt.s32.totalorder %s2696_s17, %s2318_s9 }
  0x54   : > { %p2315_p5 = pnand %p2313_p0, %p2704_p11  ;;  %p2321_p2 = scmp.lt.s32.totalorder %s2319_s16, %s2312_s20 }
  0x56   : > { %p2316_p12 = pneg %p2315_p5  ;;  %p2322_p3 = por %p2321_p2, %p2320_p8 }
  0x58   : > { %p2323_p7 = pnand %p2322_p3, %p2316_p12 }
  0x5a   : > { %2326 = shalt.err (!%p2323_p7)
}
  0x5b   : > { %s3260_s29 = smov 64   ;;  %s2527_s8 = smov [#allocation10]  }
  0x5c   : > { %2128 = dma.hbm_to_vmem [thread:$0]  (!%p2685_p6), %s2694_s30, 4096, %s2696_s17, %s2698_s11, %s3260_s29, %s3260_s29, %s2525_s22  }
  0x5d   : > { %s254_s23 = sshll.u32 %s2527_s8, 4  ;;  %s1668_s26 = sshll.u32 %s2653_s19, 4  ;;  %s255_s23 = int_to_ptr.vmem [resolvable:$true] %s254_s23 }
  0x5e   : > { %s2327_s16 = scalar_lea.hbm %s3219_s4, 2048  ;;  %p3261_p8 = scmp.ne.s32.totalorder %s3253_s18, 0 }
  0x5f   : > { %p2328_p2 = scmp.ne.s32.totalorder %s3219_s4, %s2327_s16  ;;  %p2334_p1 = scmp.lt.u32.totalorder %s2327_s16, %s3219_s4 }
  0x60   : > { %p3262_p13 = pneg %p3261_p8 }
  0x62   : > { %p2330_p9 = pnand %p2328_p2, %p3262_p13 }
  0x64   : > { %p2331_p10 = pneg %p2330_p9 }
  0x66   : > { %p2336_p4 = pnand %p2334_p1, %p2331_p10 }
  0x68   : > { %2339 = shalt.err (!%p2336_p4)
}
  0x69   : > { %s2340_s30 = scalar_lea.vmem %s255_s23, 2048  ;;  %p3263_p5 = pmov %p3262_p13 }
  0x6a   : > { %p2341_p0 = scmp.ne.s32.totalorder %s255_s23, %s2340_s30  ;;  %p2348_p7 = scmp.lt.s32.totalorder %s255_s23, %s255_s23 }
  0x6b   : > { %p2349_p6 = scmp.lt.s32.totalorder %s2340_s30, %s2340_s30 }
  0x6c   : > { %p2343_p12 = pnand %p2341_p0, %p3263_p5 }
  0x6d   : > { %p2350_p11 = por %p2349_p6, %p2348_p7 }
  0x6e   : > { %p2344_p3 = pneg %p2343_p12 }
  0x70   : > { %p2351_p2 = pnand %p2350_p11, %p2344_p3 }
  0x72   : > { %2354 = shalt.err (!%p2351_p2)
}
  0x73   : > { %2121 = dma.hbm_to_vmem [thread:$0]  (!%p3261_p8), %s3219_s4, 2048, %s255_s23, [#allocation9], %s3260_s29, %s3260_s29, %s2525_s22  }
  0x74   : > { %s1761_s24 = sshll.u32 %s2521_s27, 8  ;;  %s275_s18 = scalar_lea.vmem [#allocation2], %s1668_s26 }
  0x75   : > { %s2759_s8 = scalar_lea.hbm %s3215_s0, %s1761_s24  ;;  %s282_s9 = sshll.u32 %s275_s18, 4  ;;  %s2761_s9 = int_to_ptr.vmem [resolvable:$true] %s282_s9 }
  0x76   : > { %s1675_s20 = sshll.u32 %s2653_s19, 2  ;;  %s272_s16 = scalar_lea.sflag [#allocation3], %s2653_s19 }
  0x77   : > { %s2355_s30 = scalar_lea.hbm %s2759_s8, 256  ;;  %p3264_p11 = scmp.ne.s32.totalorder %s3259_s21, 0 }
  0x78   : > { %p2356_p6 = scmp.ne.s32.totalorder %s2759_s8, %s2355_s30  ;;  %s2360_s3 = scalar_lea.hbm %s3215_s0, 512 }
  0x79   : > { %p2361_p9 = scmp.lt.u32.totalorder %s2759_s8, %s3215_s0  ;;  %p2362_p10 = scmp.lt.u32.totalorder %s2360_s3, %s2355_s30 }
  0x7a   : > { %p2358_p8 = pnand %p2356_p6, %p3264_p11  ;;  %p2364_p4 = scmp.lt.u32.totalorder %s2355_s30, %s2759_s8 }
  0x7b   : > { %p2363_p1 = por %p2362_p10, %p2361_p9 }
  0x7c   : > { %p2359_p13 = pneg %p2358_p8 }
  0x7d   : > { %p2365_p0 = por %p2364_p4, %p2363_p1 }
  0x7f   : > { %p2366_p5 = pnand %p2365_p0, %p2359_p13 }
  0x81   : > { %2369 = shalt.err (!%p2366_p5)
}
  0x82   : > { %s2370_s26 = scalar_lea.vmem %s2761_s9, 256  ;;  %s2528_s17 = smov [#allocation2]  }
  0x83   : > { %p2371_p12 = scmp.ne.s32.totalorder %s2761_s9, %s2370_s26  ;;  %s2375_s18 = sshll.u32 %s2528_s17, 4  ;;  %s2376_s18 = int_to_ptr.vmem [resolvable:$false] %s2375_s18 }
  0x84   : > { %s2377_s23 = scalar_lea.vmem %s2376_s18, 512  ;;  %p2378_p2 = scmp.lt.s32.totalorder %s2761_s9, %s2376_s18 }
  0x85   : > { %p2373_p3 = pnand %p2371_p12, %p3264_p11  ;;  %p2379_p6 = scmp.lt.s32.totalorder %s2377_s23, %s2370_s26 }
  0x87   : > { %p2374_p7 = pneg %p2373_p3  ;;  %p2380_p8 = por %p2379_p6, %p2378_p2 }
  0x89   : > { %p2381_p9 = pnand %p2380_p8, %p2374_p7 }
  0x8b   : > { %2384 = shalt.err (!%p2381_p9)
}
  0x8c   : > { %p3265_p13 = scmp.ne.s32.totalorder %s3257_s10, 0  ;;  %s1764_s30 = sshll.u32 %s2521_s27, 6 }
  0x8d   : > { %s2795_s24 = scalar_lea.hbm %s3217_s2, %s1764_s30  ;;  %s318_s14 = scalar_lea.vmem [#allocation7], %s1675_s20 }
  0x8e   : > { %2125 = dma.hbm_to_vmem [thread:$0]  (!%p3265_p13), %s2759_s8, 256, %s2761_s9, %s272_s16, %s3260_s29, %s3260_s29, %s2525_s22  }
  0x8f   : > { %s325_s26 = sshll.u32 %s318_s14, 4  ;;  %s2385_s17 = scalar_lea.hbm %s2795_s24, 64  ;;  %s2799_s26 = int_to_ptr.vmem [resolvable:$true] %s325_s26 }
  0x90   : > { %p2386_p10 = scmp.ne.s32.totalorder %s2795_s24, %s2385_s17  ;;  %s2390_s8 = scalar_lea.hbm %s3217_s2, 128 }
  0x91   : > { %p2391_p0 = scmp.lt.u32.totalorder %s2795_s24, %s3217_s2  ;;  %p2392_p5 = scmp.lt.u32.totalorder %s2390_s8, %s2385_s17 }
  0x92   : > { %p2388_p1 = pnand %p2386_p10, %p3264_p11  ;;  %p2394_p3 = scmp.lt.u32.totalorder %s2385_s17, %s2795_s24 }
  0x93   : > { %p2393_p12 = por %p2392_p5, %p2391_p0 }
  0x94   : > { %p2389_p4 = pneg %p2388_p1 }
  0x95   : > { %p2395_p7 = por %p2394_p3, %p2393_p12 }
  0x97   : > { %p2396_p2 = pnand %p2395_p7, %p2389_p4 }
  0x99   : > { %2399 = shalt.err (!%p2396_p2)
}
  0x9a   : > { %s2400_s19 = scalar_lea.vmem %s2799_s26, 64  ;;  %s2529_s20 = smov [#allocation7]  }
  0x9b   : > { %p2401_p6 = scmp.ne.s32.totalorder %s2799_s26, %s2400_s19  ;;  %s2405_s18 = sshll.u32 %s2529_s20, 4  ;;  %s2406_s18 = int_to_ptr.vmem [resolvable:$false] %s2405_s18 }
  0x9c   : > { %s2407_s23 = scalar_lea.vmem %s2406_s18, 128  ;;  %p2408_p10 = scmp.lt.s32.totalorder %s2799_s26, %s2406_s18 }
  0x9d   : > { %p2403_p8 = pnand %p2401_p6, %p3264_p11  ;;  %p2409_p1 = scmp.lt.s32.totalorder %s2407_s23, %s2400_s19 }
  0x9f   : > { %p2404_p9 = pneg %p2403_p8  ;;  %p2410_p0 = por %p2409_p1, %p2408_p10 }
  0xa1   : > { %p2411_p5 = pnand %p2410_p0, %p2404_p9 }
  0xa3   : > { %2414 = shalt.err (!%p2411_p5)
}
  0xa4   : > { %s2530_s30 = smov 16   ;;  %s2531_s1 = smov 1  }
  0xa5   : > { %2131 = dma.hbm_to_vmem [thread:$0]  (!%p3265_p13), %s2795_s24, 64, %s2799_s26, %s2698_s11, %s2530_s30, %s2530_s30, %s2531_s1  }
  0xa6   : > { %p3266_p11 = scmp.ne.s32.totalorder %s3252_s15, 0 }
  0xa7   : > { %s2826_s21 = sand.u32 (!%p3266_p11), 1, %s2513_s25   ;;  %p3267_p4 = scmp.ne.s32.totalorder (!%p3266_p11), %s3248_s12, 0 }
  0xa8   : > { %337 = sbr.rel (%p3266_p11) target bundleno = 1482 (0x5ca), region = 44  ;;  %s1679_s3 = sshll.u32 (!%p3266_p11), %s2826_s21, 4 }
  0xa9   : > { %s340_s14 = scalar_lea.sflag (!%p3266_p11), [#allocation3], %s2826_s21  ;;  %s2830_s17 = scalar_lea.vmem (!%p3266_p11), [#allocation2], %s1679_s3 }
  0xaf   : > { %2488 = dma.done.wait (%p3267_p4), %s340_s14, 256  }
  0xb0   : > { %2490 = vsyncadd (%p3267_p4), %s340_s14, 4294967040  ;;  %s348_s15 = sand.u32 1, %s2599_s28   ;;  %s1680_s10 = sshll.u32 %s2826_s21, 8 }
  0xb1   : > { %s349_s11 = scalar_lea.sflag [#allocation6], %s348_s15  ;;  %s2838_s24 = scalar_lea.vmem [#allocation5], %s1680_s10 }
  0xb2   : > { %2492 = dma.done.wait (%p3267_p4), %s349_s11, 4160  }
  0xb3   : > { %2494 = vsyncadd (%p3267_p4), %s349_s11, 4294963136  ;;  %s1681_s26 = sshll.u32 %s2826_s21, 2  ;;  %p3268_p13 = scmp.eq.s32.totalorder %s2599_s28, 0 }
  0xb4   : > { %s2845_s22 = scalar_lea.vmem [#allocation7], %s1681_s26 }
  0xb5   : > { %2496 = dma.done.wait (%p3268_p13), [#allocation9], 3072   ;;  %p3269_p12 = pmov %p3268_p13 }
  0xb6   : > { %v2532_v0 = vmov 0.0   ;;  %v2187_v1 = vld [vmem:[#allocation8] sm:$0xff]   ;;  %v2188_v2 = vld [vmem:[#allocation8 + $0x8] sm:$0xff]   ;;  %v2189_v3 = vld [vmem:[#allocation8 + $0x10] sm:$0xff]   ;;  %vm2533_vm0 = vmmov 0   ;;  %s1684_s12 = sshll.u32 %s2826_s21, 5 }
  0xb7   : > { %2498 = vsyncadd (%p3269_p12), [#allocation9], 4294964224  ;;  %1893 = vmatprep.subr.bf16.mxu1 %v2532_v0  ;;  %1873 = vmatprep.subr.bf16.mxu0 %v2187_v1  ;;  %v2190_v4 = vld [vmem:[#allocation8 + $0x18] sm:$0xff]   ;;  %v2191_v7 = vld [vmem:[#allocation8 + $0x20] sm:$0xff]   ;;  %s3075_s29 = scalar_lea.vmem [#allocation12], %s1684_s12  ;;  %s1769_s8 = sshll.u32 %s2599_s28, 9 }
  0xb8   : > { %1874 = vmatpush3.bf16.msra.mxu0 %v2187_v1  ;;  %v2853_v5 = vld [vmem:[%s2830_s17] sm:$0xff]   ;;  %v2862_v9 = vld [vmem:[%s2838_s24 + $0x8] sm:$0xff]   ;;  %v2193_v10 = vld [vmem:[#allocation8 + $0x30] sm:$0xff]   ;;  %1909 = vmatprep.mubr.msk.bf16.mxu1 %vm2533_vm0, %v2532_v0  ;;  %s3124_s19 = scalar_lea.hbm %s3222_s7, %s1769_s8  ;;  %s1496_s20 = sshll.u32 %s3075_s29, 4  ;;  %s3127_s20 = int_to_ptr.vmem [resolvable:$true] %s1496_s20 }
  0xb9   : > { %1875 = vmatprep.subr.bf16.mxu0 %v2188_v2  ;;  %1889 = vmatprep.mubr.bf16.mxu0 %v2853_v5  ;;  %v2857_v6 = vld [vmem:[%s2838_s24] sm:$0xff]   ;;  %v2192_v8 = vld [vmem:[#allocation8 + $0x28] sm:$0xff]   ;;  %v2870_v13 = vld [vmem:[%s2830_s17 + $0x8] sm:$0xff]   ;;  %s1467_s18 = scalar_lea.sflag [#allocation13], %s2826_s21  ;;  %s2415_s23 = scalar_lea.vmem %s3127_s20, 512 }
  0xba   : > { %1894 = vmatpush3.bf16.xpose.msra.mxu1 %v2857_v6  ;;  %v2194_v11 = vld [vmem:[#allocation8 + $0x38] sm:$0xff]   ;;  %v2867_v12 = vld [vmem:[%s2838_s24 + $0x10] sm:$0xff]   ;;  %v2875_v14 = vld [vmem:[%s2838_s24 + $0x18] sm:$0xff]   ;;  %p2416_p3 = scmp.ne.s32.totalorder %s3127_s20, %s2415_s23  ;;  %p3270_p7 = scmp.ne.s32.totalorder %s3249_s13, 0 }
  0xbb   : > { %1895 = vmatprep.subr.bf16.mxu1 %v2532_v0  ;;  %v2880_v15 = vld [vmem:[%s2838_s24 + $0x40] sm:$0xff]   ;;  %v2890_v17 = vld [vmem:[%s2838_s24 + $0x48] sm:$0xff]   ;;  %v2900_v19 = vld [vmem:[%s2838_s24 + $0x50] sm:$0xff]   ;;  %s2534_s30 = smov [#allocation12]  }
  0xbc   : > { %1876 = vmatpush3.bf16.msra.mxu0 %v2188_v2  ;;  %v2885_v16 = vld [vmem:[%s2838_s24 + $0x20] sm:$0xff]   ;;  %v2896_v18 = vld [vmem:[%s2838_s24 + $0x28] sm:$0xff]   ;;  %v2906_v20 = vld [vmem:[%s2838_s24 + $0x30] sm:$0xff]   ;;  %p2417_p2 = pnand %p2416_p3, %p3270_p7  ;;  %s2419_s1 = sshll.u32 %s2534_s30, 4  ;;  %s2420_s1 = int_to_ptr.vmem [resolvable:$false] %s2419_s1 }
  0xbd   : > { %1877 = vmatprep.subr.bf16.mxu0 %v2189_v3  ;;  %v2910_v21 = vld [vmem:[%s2838_s24 + $0x58] sm:$0xff]   ;;  %v2920_v23 = vld [vmem:[%s2838_s24 + $0x60] sm:$0xff]   ;;  %v2927_v24 = vld [vmem:[%s2838_s24 + $0x68] sm:$0xff]   ;;  %s2421_s3 = scalar_lea.vmem %s2420_s1, 1024  ;;  %p2422_p8 = scmp.lt.s32.totalorder %s3127_s20, %s2420_s1 }
  0xbe   : > { %v2916_v22 = vld [vmem:[%s2838_s24 + $0x38] sm:$0xff]   ;;  %v2932_v25 = vld [vmem:[%s2838_s24 + $0x70] sm:$0xff]   ;;  %v2946_v29 = vld [vmem:[%s2838_s24 + $0x80] sm:$0xff]   ;;  %p2418_p6 = pneg %p2417_p2  ;;  %p2423_p9 = scmp.lt.s32.totalorder %s2421_s3, %s2415_s23 }
  0xbf   : > { %v2937_v26 = vld [vmem:[%s2838_s24 + $0x78] sm:$0xff]   ;;  %v2949_v33 = vld [vmem:[%s2838_s24 + $0xc0] sm:$0xff]   ;;  %v2960_v35 = vld [vmem:[%s2838_s24 + $0x88] sm:$0xff]  }
  0xc0   : > { %1878 = vmatpush3.bf16.msra.mxu0 %v2189_v3  ;;  %v2963_v36 = vld [vmem:[%s2838_s24 + $0xc8] sm:$0xff]   ;;  %v2970_v37 = vld [vmem:[%s2838_s24 + $0x90] sm:$0xff]   ;;  %v2980_v39 = vld [vmem:[%s2838_s24 + $0x98] sm:$0xff]   ;;  %p2424_p10 = por %p2423_p9, %p2422_p8 }
  0xc1   : > { %1879 = vmatprep.subr.bf16.mxu0 %v2190_v4  ;;  %v2973_v38 = vld [vmem:[%s2838_s24 + $0xd0] sm:$0xff]   ;;  %v2983_v40 = vld [vmem:[%s2838_s24 + $0xd8] sm:$0xff]   ;;  %v2990_v41 = vld [vmem:[%s2838_s24 + $0xa0] sm:$0xff]  }
  0xc2   : > { %1896 = vmatpush3.bf16.xpose.msra.mxu1 %v2862_v9  ;;  %v2993_v42 = vld [vmem:[%s2838_s24 + $0xe0] sm:$0xff]   ;;  %v3000_v43 = vld [vmem:[%s2838_s24 + $0xa8] sm:$0xff]   ;;  %v3010_v45 = vld [vmem:[%s2838_s24 + $0xb0] sm:$0xff]   ;;  %p2425_p1 = pnand %p2424_p10, %p2418_p6 }
  0xc3   : > { %1897 = vmatprep.subr.bf16.mxu1 %v2532_v0  ;;  %v3003_v44 = vld [vmem:[%s2838_s24 + $0xe8] sm:$0xff]   ;;  %v3013_v46 = vld [vmem:[%s2838_s24 + $0xf0] sm:$0xff]   ;;  %v3020_v47 = vld [vmem:[%s2838_s24 + $0xb8] sm:$0xff]  }
  0xc4   : > { %1880 = vmatpush3.bf16.msra.mxu0 %v2190_v4  ;;  %v3023_v48 = vld [vmem:[%s2838_s24 + $0xf8] sm:$0xff]   ;;  %v1700_v51 = vld [vmem:[%s2845_s22] ss:$0 sm:$0xff]  ;;  %v1701_v56 = vld [vmem:[%s2845_s22 + $0x1] ss:$0 sm:$0xff] }
  0xc5   : > { %1881 = vmatprep.subr.bf16.mxu0 %v2191_v7  ;;  %v1702_v63 = vld [vmem:[%s2845_s22 + $0x2] ss:$0 sm:$0xff] }
  0xc8   : > { %1882 = vmatpush3.bf16.msra.mxu0 %v2191_v7 }
  0xc9   : > { %1883 = vmatprep.subr.bf16.mxu0 %v2192_v8 }
  0xca   : > { %1898 = vmatpush3.bf16.xpose.msra.mxu1 %v2867_v12 }
  0xcb   : > { %1899 = vmatprep.subr.bf16.mxu1 %v2532_v0 }
  0xcc   : > { %1884 = vmatpush3.bf16.msra.mxu0 %v2192_v8 }
  0xcd   : > { %1885 = vmatprep.subr.bf16.mxu0 %v2193_v10 }
  0xd0   : > { %1886 = vmatpush3.bf16.msra.mxu0 %v2193_v10 }
  0xd1   : > { %1887 = vmatprep.subr.bf16.mxu0 %v2194_v11 }
  0xd2   : > { %1900 = vmatpush3.bf16.xpose.msra.mxu1 %v2875_v14 }
  0xd3   : > { %1901 = vmatprep.subr.bf16.mxu1 %v2532_v0 }
  0xd4   : > { %1888 = vmatpush3.bf16.msra.mxu0 %v2194_v11 }
  0xd5   : > { %1913 = vmatprep.subr.bf16.mxu0 %v2532_v0 }
  0xd7   : > { %1890 = vmatmul.mubr.bf16.vlgmr.msra.gmra.mrb[0].mxu0 %v2870_v13 }
  0xd8   : > { %1929 = vmatprep.mubr.msk.bf16.mxu0 %vm2533_vm0, %v2532_v0 }
  0xda   : > { %1902 = vmatpush3.bf16.xpose.msra.mxu1 %v2885_v16 }
  0xdb   : > { %1903 = vmatprep.subr.bf16.mxu1 %v2532_v0 }
  0xdd   : > { %1914 = vmatpush3.bf16.xpose.msra.mxu0 %v2880_v15 }
  0xde   : > { %1915 = vmatprep.subr.bf16.mxu0 %v2532_v0 }
  0xe2   : > { %1904 = vmatpush3.bf16.xpose.msra.mxu1 %v2896_v18 }
  0xe3   : > { %1905 = vmatprep.subr.bf16.mxu1 %v2532_v0 }
  0xe5   : > { %1916 = vmatpush3.bf16.xpose.msra.mxu0 %v2890_v17 }
  0xe6   : > { %1917 = vmatprep.subr.bf16.mxu0 %v2532_v0 }
  0xea   : > { %1906 = vmatpush3.bf16.xpose.msra.mxu1 %v2906_v20 }
  0xeb   : > { %1907 = vmatprep.subr.bf16.mxu1 %v2532_v0 }
  0xed   : > { %1918 = vmatpush3.bf16.xpose.msra.mxu0 %v2900_v19 }
  0xee   : > { %1919 = vmatprep.subr.bf16.mxu0 %v2532_v0 }
  0xf2   : > { %1908 = vmatpush3.bf16.xpose.msra.mxu1 %v2916_v22 }
  0xf3   : > { %1933 = vmatprep.subr.bf16.mxu1 %v2532_v0 }
  0xf5   : > { %1920 = vmatpush3.bf16.xpose.msra.mxu0 %v2910_v21 }
  0xf6   : > { %1921 = vmatprep.subr.bf16.mxu0 %v2532_v0 }
  0xfd   : > { %1922 = vmatpush3.bf16.xpose.msra.mxu0 %v2920_v23 }
  0xfe   : > { %1923 = vmatprep.subr.bf16.mxu0 %v2532_v0 }
 0x105   : > { %1924 = vmatpush3.bf16.xpose.msra.mxu0 %v2927_v24 }
 0x106   : > { %1925 = vmatprep.subr.bf16.mxu0 %v2532_v0 }
 0x10d   : > { %1926 = vmatpush3.bf16.xpose.msra.mxu0 %v2932_v25 }
 0x10e   : > { %1927 = vmatprep.subr.bf16.mxu0 %v2532_v0 }
 0x115   : > { %1928 = vmatpush3.bf16.xpose.msra.mxu0 %v2937_v26 }
 0x116   : > { %1953 = vmatprep.subr.bf16.mxu0 %v2532_v0 }
 0x1aa   : > { %v1891_v27 = vpop.f32.mrb[0].mxu0 }
 0x1ab   : > { %v599_v28 = vpop.f32.mrb[1].mxu0  ;;  %v1767_v49 = vpack.c.bf16 %v1891_v27, %v1891_v27 }
 0x1ac   : > { %v1765_v30 = vpack.c.bf16 %v599_v28, %v599_v28  ;;  %v1892_v31 = vpop.f32.mrb[2].mxu0 }
 0x1ad   : > { %v602_v32 = vpop.f32.mrb[3].mxu0  ;;  %v1768_v50 = vpack.c.bf16 %v1892_v31, %v1892_v31 }
 0x1ae   : > { %v1766_v34 = vpack.c.bf16 %v602_v32, %v602_v32  ;;  %1910 = vmatmul.mubr.bf16.vlgmr.msra.gmra.mrb[0].mxu1 %v1765_v30 }
 0x1af   : > { %1934 = vmatpush3.bf16.xpose.msra.mxu1 %v2946_v29  ;;  %1949 = vmatprep.mubr.msk.bf16.mxu1 %vm2533_vm0, %v2532_v0 }
 0x1b0   : > { %1930 = vmatmul.mubr.bf16.vlgmr.msra.gmra.mrb[4].mxu0 %v1766_v34  ;;  %1935 = vmatprep.subr.bf16.mxu1 %v2532_v0 }
 0x1b1   : > { %1954 = vmatpush3.bf16.xpose.msra.mxu0 %v2949_v33  ;;  %1969 = vmatprep.mubr.msk.bf16.mxu0 %vm2533_vm0, %v2532_v0 }
 0x1b2   : > { %1955 = vmatprep.subr.bf16.mxu0 %v2532_v0 }
 0x1b7   : > { %1936 = vmatpush3.bf16.xpose.msra.mxu1 %v2960_v35 }
 0x1b8   : > { %1937 = vmatprep.subr.bf16.mxu1 %v2532_v0 }
 0x1b9   : > { %1956 = vmatpush3.bf16.xpose.msra.mxu0 %v2963_v36 }
 0x1ba   : > { %1957 = vmatprep.subr.bf16.mxu0 %v2532_v0 }
 0x1bf   : > { %1938 = vmatpush3.bf16.xpose.msra.mxu1 %v2970_v37 }
 0x1c0   : > { %1939 = vmatprep.subr.bf16.mxu1 %v2532_v0 }
 0x1c1   : > { %1958 = vmatpush3.bf16.xpose.msra.mxu0 %v2973_v38 }
 0x1c2   : > { %1959 = vmatprep.subr.bf16.mxu0 %v2532_v0 }
 0x1c7   : > { %1940 = vmatpush3.bf16.xpose.msra.mxu1 %v2980_v39 }
 0x1c8   : > { %1941 = vmatprep.subr.bf16.mxu1 %v2532_v0 }
 0x1c9   : > { %1960 = vmatpush3.bf16.xpose.msra.mxu0 %v2983_v40 }
 0x1ca   : > { %1961 = vmatprep.subr.bf16.mxu0 %v2532_v0 }
 0x1cf   : > { %1942 = vmatpush3.bf16.xpose.msra.mxu1 %v2990_v41 }
 0x1d0   : > { %1943 = vmatprep.subr.bf16.mxu1 %v2532_v0 }
 0x1d1   : > { %1962 = vmatpush3.bf16.xpose.msra.mxu0 %v2993_v42 }
 0x1d2   : > { %1963 = vmatprep.subr.bf16.mxu0 %v2532_v0 }
 0x1d7   : > { %1944 = vmatpush3.bf16.xpose.msra.mxu1 %v3000_v43 }
 0x1d8   : > { %1945 = vmatprep.subr.bf16.mxu1 %v2532_v0 }
 0x1d9   : > { %1964 = vmatpush3.bf16.xpose.msra.mxu0 %v3003_v44 }
 0x1da   : > { %1965 = vmatprep.subr.bf16.mxu0 %v2532_v0 }
 0x1df   : > { %1946 = vmatpush3.bf16.xpose.msra.mxu1 %v3010_v45 }
 0x1e0   : > { %1947 = vmatprep.subr.bf16.mxu1 %v2532_v0 }
 0x1e1   : > { %1966 = vmatpush3.bf16.xpose.msra.mxu0 %v3013_v46 }
 0x1e2   : > { %1967 = vmatprep.subr.bf16.mxu0 %v2532_v0 }
 0x1e7   : > { %1948 = vmatpush3.bf16.xpose.msra.mxu1 %v3020_v47 }
 0x1e8   : > { %1973 = vmatprep.subr.bf16.mxu1 %v2532_v0 }
 0x1e9   : > { %1968 = vmatpush3.bf16.xpose.msra.mxu0 %v3023_v48 }
 0x1ea   : > { %1993 = vmatprep.subr.bf16.mxu0 %v2532_v0 }
 0x1ee   : > { %1950 = vmatmul.mubr.bf16.vlgmr.msra.gmra.mrb[4].mxu1 %v1767_v49 }
 0x1ef   : > { %1974 = vmatpush3.bf16.msra.mxu1 %v2857_v6  ;;  %1989 = vmatprep.mubr.msk.bf16.mxu1 %vm2533_vm0, %v2532_v0  ;;  %v1703_v6 = vld [vmem:[%s2845_s22 + $0x3] ss:$0 sm:$0xff] }
 0x1f0   : > { %1970 = vmatmul.mubr.bf16.vlgmr.msra.gmra.mrb[8].mxu0 %v1768_v50  ;;  %1975 = vmatprep.subr.bf16.mxu1 %v2532_v0 }
 0x1f1   : > { %1994 = vmatpush3.bf16.msra.mxu0 %v2880_v15  ;;  %2009 = vmatprep.mubr.msk.bf16.mxu0 %vm2533_vm0, %v2532_v0 }
 0x1f2   : > { %1995 = vmatprep.subr.bf16.mxu0 %v2532_v0 }
 0x1f3   : > { %1976 = vmatpush3.bf16.msra.mxu1 %v2862_v9 }
 0x1f4   : > { %1977 = vmatprep.subr.bf16.mxu1 %v2532_v0 }
 0x1f5   : > { %1996 = vmatpush3.bf16.msra.mxu0 %v2890_v17 }
 0x1f6   : > { %1997 = vmatprep.subr.bf16.mxu0 %v2532_v0 }
 0x1f7   : > { %1978 = vmatpush3.bf16.msra.mxu1 %v2867_v12 }
 0x1f8   : > { %1979 = vmatprep.subr.bf16.mxu1 %v2532_v0 }
 0x1f9   : > { %1998 = vmatpush3.bf16.msra.mxu0 %v2900_v19 }
 0x1fa   : > { %1999 = vmatprep.subr.bf16.mxu0 %v2532_v0 }
 0x1fb   : > { %1980 = vmatpush3.bf16.msra.mxu1 %v2875_v14 }
 0x1fc   : > { %1981 = vmatprep.subr.bf16.mxu1 %v2532_v0 }
 0x1fd   : > { %2000 = vmatpush3.bf16.msra.mxu0 %v2910_v21 }
 0x1fe   : > { %2001 = vmatprep.subr.bf16.mxu0 %v2532_v0 }
 0x1ff   : > { %1982 = vmatpush3.bf16.msra.mxu1 %v2885_v16 }
 0x200   : > { %1983 = vmatprep.subr.bf16.mxu1 %v2532_v0 }
 0x201   : > { %2002 = vmatpush3.bf16.msra.mxu0 %v2920_v23 }
 0x202   : > { %2003 = vmatprep.subr.bf16.mxu0 %v2532_v0 }
 0x203   : > { %1984 = vmatpush3.bf16.msra.mxu1 %v2896_v18 }
 0x204   : > { %1985 = vmatprep.subr.bf16.mxu1 %v2532_v0 }
 0x205   : > { %2004 = vmatpush3.bf16.msra.mxu0 %v2927_v24 }
 0x206   : > { %2005 = vmatprep.subr.bf16.mxu0 %v2532_v0 }
 0x207   : > { %1986 = vmatpush3.bf16.msra.mxu1 %v2906_v20 }
 0x208   : > { %1987 = vmatprep.subr.bf16.mxu1 %v2532_v0 }
 0x209   : > { %2006 = vmatpush3.bf16.msra.mxu0 %v2932_v25 }
 0x20a   : > { %2007 = vmatprep.subr.bf16.mxu0 %v2532_v0 }
 0x20b   : > { %1988 = vmatpush3.bf16.msra.mxu1 %v2916_v22 }
 0x20c   : > { %2013 = vmatprep.subr.bf16.mxu1 %v2532_v0 }
 0x20d   : > { %2008 = vmatpush3.bf16.msra.mxu0 %v2937_v26 }
 0x20e   : > { %2033 = vmatprep.subr.bf16.mxu0 %v2532_v0 }
 0x281   : > { %v740_v52 = vpop.f32.mrb[0].mxu1 }
 0x282   : > { %v741_v53 = vadd.f32 %v1700_v51, %v740_v52  ;;  %v1911_v54 = vpop.f32.mrb[1].mxu1 }
 0x283   : > { %v743_v55 = vpop.f32.mrb[2].mxu1  ;;  %v828_v57 = vpop.f32.mrb[4].mxu0  ;;  %v2239_v54 = vld [vmem:[#allocation10 + $0x10] sm:$0xff]  }
 0x284   : > { %1010 = vmax.xlane.f32.xlu0 %v741_v53  ;;  %v1912_v58 = vpop.f32.mrb[3].mxu1  ;;  %v1931_v59 = vpop.f32.mrb[5].mxu0  ;;  %v829_v61 = vadd.f32 %v1701_v56, %v828_v57  ;;  %v2240_v55 = vld [vmem:[#allocation10 + $0x18] sm:$0xff]   ;;  %v2241_v56 = vld [vmem:[#allocation10 + $0x20] sm:$0xff]   ;;  %v2242_v57 = vld [vmem:[#allocation10 + $0x28] sm:$0xff]  }
 0x285   : > { %v831_v60 = vpop.f32.mrb[6].mxu0  ;;  %v2243_v58 = vld [vmem:[#allocation10 + $0x30] sm:$0xff]   ;;  %v2244_v59 = vld [vmem:[#allocation10 + $0x38] sm:$0xff]  }
 0x286   : > { %v1932_v62 = vpop.f32.mrb[7].mxu0 }
 0x288   : > { %1012 = vmax.xlane.f32.xlu0 %v829_v61 }
 0x2c1   : > { %v916_v1 = vpop.f32.mrb[4].mxu1 }
 0x2c2   : > { %v917_v2 = vadd.f32 %v1702_v63, %v916_v1  ;;  %v1951_v3 = vpop.f32.mrb[5].mxu1 }
 0x2c3   : > { %v919_v4 = vpop.f32.mrb[6].mxu1  ;;  %v1004_v7 = vpop.f32.mrb[8].mxu0 }
 0x2c4   : > { %1014 = vmax.xlane.f32.xlu1 %v917_v2  ;;  %v1952_v8 = vpop.f32.mrb[7].mxu1  ;;  %v1971_v9 = vpop.f32.mrb[9].mxu0  ;;  %v1005_v11 = vadd.f32 %v1703_v6, %v1004_v7 }
 0x2c5   : > { %v1007_v10 = vpop.f32.mrb[10].mxu0 }
 0x2c6   : > { %v1972_v12 = vpop.f32.mrb[11].mxu0 }
 0x2c8   : > { %1016 = vmax.xlane.f32.xlu1 %v1005_v11 }
 0x311   : > { %v1011_v14 = vpop.xlane.xlu0 %1010 }
 0x312   : > { %v1018_v15 = vsub.f32 %v741_v53, %v1011_v14 }
 0x314   : > { %v1022_v16 = vmul.f32 1.442695, %v1018_v15 }
 0x315   : > { %v1013_v17 = vpop.xlane.xlu0 %1012 }
 0x316   : > { %2245 = vpow2.f32 %v1022_v16  ;;  %v1019_v18 = vsub.f32 %v829_v61, %v1013_v17 }
 0x318   : > { %v1024_v19 = vmul.f32 1.442695, %v1019_v18 }
 0x31a   : > { %2247 = vpow2.f32 %v1024_v19 }
 0x320   : > { %v2246_v20 = vpop.eup %2245 }
 0x321   : > { %1030 = vadd.xlane.f32.xlu0 %v2246_v20 }
 0x324   : > { %v2248_v21 = vpop.eup %2247 }
 0x325   : > { %1032 = vadd.xlane.f32.xlu1 %v2248_v21 }
 0x351   : > { %v1015_v22 = vpop.xlane.xlu1 %1014 }
 0x352   : > { %v1020_v23 = vsub.f32 %v917_v2, %v1015_v22 }
 0x354   : > { %v1026_v24 = vmul.f32 1.442695, %v1020_v23 }
 0x355   : > { %v1017_v25 = vpop.xlane.xlu1 %1016 }
 0x356   : > { %2249 = vpow2.f32 %v1026_v24  ;;  %v1021_v26 = vsub.f32 %v1005_v11, %v1017_v25 }
 0x358   : > { %v1028_v27 = vmul.f32 1.442695, %v1021_v26 }
 0x35a   : > { %2251 = vpow2.f32 %v1028_v27 }
 0x360   : > { %v2250_v28 = vpop.eup %2249 }
 0x361   : > { %1034 = vadd.xlane.f32.xlu0 %v2250_v28 }
 0x364   : > { %v3069_v30 = vpop.eup %2251 }
 0x365   : > { %1036 = vadd.xlane.f32.xlu1 %v3069_v30 }
 0x3ae   : > { %v1031_v31 = vpop.xlane.xlu0 %1030 }
 0x3af   : > { %2253 = vrcp.f32 %v1031_v31 }
 0x3b2   : > { %v1033_v32 = vpop.xlane.xlu1 %1032 }
 0x3b3   : > { %2255 = vrcp.f32 %v1033_v32 }
 0x3b9   : > { %v2254_v34 = vpop.eup %2253 }
 0x3ba   : > { %v1042_v49 = vmul.f32 %v2254_v34, %v2246_v20 }
 0x3bc   : > { %1046 = vst [vmem:[%s3075_s29] sm:$0xff] %v1042_v49  ;;  %v1050_v50 = vpack.c.bf16 %v1042_v49, %v1042_v49 }
 0x3bd   : > { %v2256_v51 = vpop.eup %2255 }
 0x3be   : > { %1990 = vmatmul.mubr.bf16.vlgmr.msra.gmra.mrb[8].mxu1 %v1050_v50  ;;  %v1043_v52 = vmul.f32 %v2256_v51, %v2248_v21 }
 0x3bf   : > { %2014 = vmatpush3.bf16.msra.mxu1 %v2946_v29  ;;  %2029 = vmatprep.mubr.msk.bf16.mxu1 %vm2533_vm0, %v2532_v0  ;;  %v2229_v29 = vld [vmem:[#allocation10 + $0x40] sm:$0xff]  }
 0x3c0   : > { %1047 = vst [vmem:[%s3075_s29 + $0x8] sm:$0xff] %v1043_v52  ;;  %v1051_v53 = vpack.c.bf16 %v1043_v52, %v1043_v52  ;;  %2015 = vmatprep.subr.bf16.mxu1 %v2532_v0 }
 0x3c2   : > { %2010 = vmatmul.mubr.bf16.vlgmr.msra.gmra.mrb[12].mxu0 %v1051_v53 }
 0x3c3   : > { %2016 = vmatpush3.bf16.msra.mxu1 %v2960_v35  ;;  %2034 = vmatpush3.bf16.msra.mxu0 %v2949_v33 }
 0x3c4   : > { %2017 = vmatprep.subr.bf16.mxu1 %v2532_v0  ;;  %2035 = vmatprep.subr.bf16.mxu0 %v2532_v0 }
 0x3c5   : > { %2049 = vmatprep.mubr.msk.bf16.mxu0 %vm2533_vm0, %v2532_v0 }
 0x3c7   : > { %2018 = vmatpush3.bf16.msra.mxu1 %v2970_v37  ;;  %2036 = vmatpush3.bf16.msra.mxu0 %v2963_v36 }
 0x3c8   : > { %2019 = vmatprep.subr.bf16.mxu1 %v2532_v0  ;;  %2037 = vmatprep.subr.bf16.mxu0 %v2532_v0 }
 0x3cb   : > { %2020 = vmatpush3.bf16.msra.mxu1 %v2980_v39  ;;  %2038 = vmatpush3.bf16.msra.mxu0 %v2973_v38  ;;  %v2230_v39 = vld [vmem:[#allocation10 + $0x48] sm:$0xff]  }
 0x3cc   : > { %2021 = vmatprep.subr.bf16.mxu1 %v2532_v0  ;;  %2039 = vmatprep.subr.bf16.mxu0 %v2532_v0 }
 0x3cf   : > { %2022 = vmatpush3.bf16.msra.mxu1 %v2990_v41  ;;  %2040 = vmatpush3.bf16.msra.mxu0 %v2983_v40 }
 0x3d0   : > { %2023 = vmatprep.subr.bf16.mxu1 %v2532_v0  ;;  %2041 = vmatprep.subr.bf16.mxu0 %v2532_v0 }
 0x3d3   : > { %2024 = vmatpush3.bf16.msra.mxu1 %v3000_v43  ;;  %2042 = vmatpush3.bf16.msra.mxu0 %v2993_v42  ;;  %v2231_v42 = vld [vmem:[#allocation10 + $0x50] sm:$0xff]   ;;  %v2232_v43 = vld [vmem:[#allocation10 + $0x58] sm:$0xff]  }
 0x3d4   : > { %2025 = vmatprep.subr.bf16.mxu1 %v2532_v0  ;;  %2043 = vmatprep.subr.bf16.mxu0 %v2532_v0 }
 0x3d7   : > { %2026 = vmatpush3.bf16.msra.mxu1 %v3010_v45  ;;  %2044 = vmatpush3.bf16.msra.mxu0 %v3003_v44  ;;  %v2233_v44 = vld [vmem:[#allocation10 + $0x60] sm:$0xff]   ;;  %v2234_v45 = vld [vmem:[#allocation10 + $0x68] sm:$0xff]  }
 0x3d8   : > { %2027 = vmatprep.subr.bf16.mxu1 %v2532_v0  ;;  %2045 = vmatprep.subr.bf16.mxu0 %v2532_v0 }
 0x3db   : > { %2028 = vmatpush3.bf16.msra.mxu1 %v3020_v47  ;;  %2046 = vmatpush3.bf16.msra.mxu0 %v3013_v46  ;;  %v2235_v46 = vld [vmem:[#allocation10 + $0x70] sm:$0xff]   ;;  %v2237_v47 = vld [vmem:[#allocation10] sm:$0xff]  }
 0x3dc   : > { %2047 = vmatprep.subr.bf16.mxu0 %v2532_v0  ;;  %2053 = vmatprep.subr.bf16.mxu1 %v2229_v29 }
 0x3df   : > { %2048 = vmatpush3.bf16.msra.mxu0 %v3023_v48  ;;  %v2238_v48 = vld [vmem:[#allocation10 + $0x8] sm:$0xff]  }
 0x3ee   : > { %v1035_v33 = vpop.xlane.xlu0 %1034 }
 0x3ef   : > { %2257 = vrcp.f32 %v1035_v33 }
 0x3f2   : > { %v1037_v35 = vpop.xlane.xlu1 %1036 }
 0x3f3   : > { %2259 = vrcp.f32 %v1037_v35 }
 0x3f9   : > { %v2258_v36 = vpop.eup %2257 }
 0x3fa   : > { %v1044_v37 = vmul.f32 %v2258_v36, %v2250_v28 }
 0x3fc   : > { %1048 = vst [vmem:[%s3075_s29 + $0x10] sm:$0xff] %v1044_v37  ;;  %v1052_v38 = vpack.c.bf16 %v1044_v37, %v1044_v37 }
 0x3fd   : > { %v2260_v40 = vpop.eup %2259 }
 0x3fe   : > { %2030 = vmatmul.mubr.bf16.vlgmr.msra.gmra.mrb[12].mxu1 %v1052_v38  ;;  %v1045_v41 = vmul.f32 %v2260_v40, %v3069_v30 }
 0x3ff   : > { %2054 = vmatpush3.bf16.msra.mxu1 %v2229_v29  ;;  %2069 = vmatprep.mubr.bf16.mxu1 %v2853_v5  ;;  %v2236_v5 = vld [vmem:[#allocation10 + $0x78] sm:$0xff]  }
 0x400   : > { %1049 = vst [vmem:[%s3075_s29 + $0x18] sm:$0xff] %v1045_v41  ;;  %v1053_v0 = vpack.c.bf16 %v1045_v41, %v1045_v41  ;;  %2055 = vmatprep.subr.bf16.mxu1 %v2230_v39 }
 0x402   : > { %2050 = vmatmul.mubr.bf16.vlgmr.msra.gmra.mrb[16].mxu0 %v1053_v0 }
 0x403   : > { %2056 = vmatpush3.bf16.msra.mxu1 %v2230_v39 }
 0x404   : > { %2057 = vmatprep.subr.bf16.mxu1 %v2231_v42 }
 0x407   : > { %2058 = vmatpush3.bf16.msra.mxu1 %v2231_v42 }
 0x408   : > { %2059 = vmatprep.subr.bf16.mxu1 %v2232_v43 }
 0x40b   : > { %2060 = vmatpush3.bf16.msra.mxu1 %v2232_v43 }
 0x40c   : > { %2061 = vmatprep.subr.bf16.mxu1 %v2233_v44 }
 0x40f   : > { %2062 = vmatpush3.bf16.msra.mxu1 %v2233_v44 }
 0x410   : > { %2063 = vmatprep.subr.bf16.mxu1 %v2234_v45 }
 0x413   : > { %2064 = vmatpush3.bf16.msra.mxu1 %v2234_v45 }
 0x414   : > { %2065 = vmatprep.subr.bf16.mxu1 %v2235_v46 }
 0x417   : > { %2066 = vmatpush3.bf16.msra.mxu1 %v2235_v46 }
 0x418   : > { %2067 = vmatprep.subr.bf16.mxu1 %v2236_v5 }
 0x41b   : > { %2068 = vmatpush3.bf16.msra.mxu1 %v2236_v5 }
 0x41c   : > { %2073 = vmatprep.subr.bf16.mxu1 %v2237_v47 }
 0x41e   : > { %2070 = vmatmul.mubr.bf16.vlgmr.msra.gmra.mrb[16].mxu1 %v2870_v13 }
 0x41f   : > { %2074 = vmatpush3.bf16.msra.mxu1 %v2237_v47 }
 0x420   : > { %2075 = vmatprep.subr.bf16.mxu1 %v2238_v48 }
 0x423   : > { %2076 = vmatpush3.bf16.msra.mxu1 %v2238_v48 }
 0x424   : > { %2077 = vmatprep.subr.bf16.mxu1 %v2239_v54 }
 0x427   : > { %2078 = vmatpush3.bf16.msra.mxu1 %v2239_v54 }
 0x428   : > { %2079 = vmatprep.subr.bf16.mxu1 %v2240_v55 }
 0x42b   : > { %2080 = vmatpush3.bf16.msra.mxu1 %v2240_v55 }
 0x42c   : > { %2081 = vmatprep.subr.bf16.mxu1 %v2241_v56 }
 0x42f   : > { %2082 = vmatpush3.bf16.msra.mxu1 %v2241_v56 }
 0x430   : > { %2083 = vmatprep.subr.bf16.mxu1 %v2242_v57 }
 0x433   : > { %2084 = vmatpush3.bf16.msra.mxu1 %v2242_v57 }
 0x434   : > { %2085 = vmatprep.subr.bf16.mxu1 %v2243_v58 }
 0x437   : > { %2086 = vmatpush3.bf16.msra.mxu1 %v2243_v58 }
 0x438   : > { %2087 = vmatprep.subr.bf16.mxu1 %v2244_v59 }
 0x43b   : > { %2088 = vmatpush3.bf16.msra.mxu1 %v2244_v59 }
 0x491   : > { %v1088_v13 = vpop.f32.mrb[8].mxu1 }
 0x492   : > { %v1991_v60 = vpop.f32.mrb[9].mxu1 }
 0x493   : > { %v1091_v61 = vpop.f32.mrb[10].mxu1 }
 0x494   : > { %v1992_v62 = vpop.f32.mrb[11].mxu1 }
 0x495   : > { %v1128_v63 = vpop.f32.mrb[12].mxu0 }
 0x496   : > { %v1214_v1 = vpack.c.bf16 %v1128_v63, %v1088_v13  ;;  %v2011_v2 = vpop.f32.mrb[13].mxu0 }
 0x497   : > { %v1131_v3 = vpop.f32.mrb[14].mxu0 }
 0x498   : > { %v2012_v4 = vpop.f32.mrb[15].mxu0  ;;  %2089 = vmatprep.mubr.bf16.mxu1 %v1214_v1 }
 0x4d1   : > { %v1168_v6 = vpop.f32.mrb[12].mxu1 }
 0x4d2   : > { %v2031_v7 = vpop.f32.mrb[13].mxu1 }
 0x4d3   : > { %v1171_v8 = vpop.f32.mrb[14].mxu1 }
 0x4d4   : > { %v2032_v9 = vpop.f32.mrb[15].mxu1 }
 0x4d5   : > { %v1208_v10 = vpop.f32.mrb[16].mxu0 }
 0x4d6   : > { %v1215_v11 = vpack.c.bf16 %v1208_v10, %v1168_v6  ;;  %v2051_v12 = vpop.f32.mrb[17].mxu0 }
 0x4d7   : > { %v1211_v14 = vpop.f32.mrb[18].mxu0 }
 0x4d8   : > { %v2052_v15 = vpop.f32.mrb[19].mxu0  ;;  %2090 = vmatmul.mubr.bf16.vlgmr.msra.gmra.mrb[16].mxu1 %v1215_v11 }
 0x4d9   : > { %2428 = shalt.err (!%p2425_p1)
}
 0x4da   : > { %s2429_s14 = scalar_lea.hbm %s3124_s19, 512  ;;  %s2433_s10 = scalar_lea.hbm %s3222_s7, 1024 }
 0x4db   : > { %p2430_p0 = scmp.ne.s32.totalorder %s3124_s19, %s2429_s14  ;;  %p2434_p4 = scmp.lt.u32.totalorder %s3124_s19, %s3222_s7 }
 0x4dc   : > { %p2435_p13 = scmp.lt.u32.totalorder %s2433_s10, %s2429_s14  ;;  %p2437_p3 = scmp.lt.u32.totalorder %s2429_s14, %s3124_s19 }
 0x4dd   : > { %p2431_p5 = pnand %p2430_p0, %p3270_p7 }
 0x4de   : > { %p2436_p12 = por %p2435_p13, %p2434_p4 }
 0x4df   : > { %p2432_p11 = pneg %p2431_p5 }
 0x4e0   : > { %p2438_p2 = por %p2437_p3, %p2436_p12 }
 0x4e2   : > { %p2439_p6 = pnand %p2438_p2, %p2432_p11 }
 0x4e4   : > { %2442 = shalt.err (!%p2439_p6)
}
 0x4e5   : > { %s2535_s26 = smov 128   ;;  %s2536_s22 = smov 8   ;;  %v1752_v16 = vld [vmem:[%s3220_s5] ss:$0 sm:$0xff] }
 0x4e6   : > { %2112 = dma.vmem_to_hbm [thread:$0]  (%p3270_p7), %s3127_s20, 512, %s3124_s19, %s1467_s18, %s2535_s26, %s2535_s26, %s2536_s22  }
 0x4e7   : > { %s407_s16 = scalar_lea.vmem [#allocation11], %s1684_s12  ;;  %s3166_s23 = scalar_lea.hbm %s3221_s6, %s1769_s8 }
 0x4e8   : > { %s1480_s19 = sshll.u32 %s407_s16, 4  ;;  %s1462_s12 = scalar_lea.sflag [#allocation4], %s2826_s21  ;;  %s3168_s19 = int_to_ptr.vmem [resolvable:$true] %s1480_s19 }
 0x4e9   : > { %s2443_s30 = scalar_lea.vmem %s3168_s19, 512  ;;  %s2537_s28 = smov [#allocation11]  }
 0x4ea   : > { %p2444_p8 = scmp.ne.s32.totalorder %s3168_s19, %s2443_s30  ;;  %s2447_s1 = sshll.u32 %s2537_s28, 4  ;;  %s2448_s1 = int_to_ptr.vmem [resolvable:$false] %s2447_s1 }
 0x4eb   : > { %s2449_s3 = scalar_lea.vmem %s2448_s1, 1024  ;;  %p2450_p1 = scmp.lt.s32.totalorder %s3168_s19, %s2448_s1 }
 0x4ec   : > { %p2445_p9 = pnand %p2444_p8, %p3270_p7  ;;  %p2451_p0 = scmp.lt.s32.totalorder %s2449_s3, %s2443_s30 }
 0x4ee   : > { %p2446_p10 = pneg %p2445_p9  ;;  %p2452_p5 = por %p2451_p0, %p2450_p1 }
 0x4f0   : > { %p2453_p11 = pnand %p2452_p5, %p2446_p10 }
 0x5ab   : > { %v2091_v17 = vpop.f32.mrb[16].mxu1 }
 0x5ac   : > { %v1451_v18 = vadd.f32 %v2091_v17, %v1752_v16  ;;  %v1427_v19 = vpop.f32.mrb[17].mxu1 }
 0x5ad   : > { %v1449_v20 = vadd.f32 %v1752_v16, %v1427_v19  ;;  %v2092_v21 = vpop.f32.mrb[18].mxu1 }
 0x5ae   : > { %2261 = vtanh.f32 %v1451_v18  ;;  %v1452_v22 = vadd.f32 %v2092_v21, %v1752_v16  ;;  %v1430_v23 = vpop.f32.mrb[19].mxu1 }
 0x5af   : > { %2263 = vtanh.f32 %v1449_v20  ;;  %v1450_v24 = vadd.f32 %v1752_v16, %v1430_v23 }
 0x5b0   : > { %2265 = vtanh.f32 %v1452_v22 }
 0x5b1   : > { %2267 = vtanh.f32 %v1450_v24 }
 0x5b8   : > { %v2262_v25 = vpop.eup %2261 }
 0x5b9   : > { %v2264_v26 = vpop.eup %2263  ;;  %1459 = vst [vmem:[%s407_s16 + $0x10] sm:$0xff] %v2262_v25 }
 0x5ba   : > { %v2266_v27 = vpop.eup %2265  ;;  %1457 = vst [vmem:[%s407_s16] sm:$0xff] %v2264_v26 }
 0x5bb   : > { %v2268_v28 = vpop.eup %2267  ;;  %1460 = vst [vmem:[%s407_s16 + $0x18] sm:$0xff] %v2266_v27 }
 0x5bc   : > { %1458 = vst [vmem:[%s407_s16 + $0x8] sm:$0xff] %v2268_v28 }
 0x5bd   : > { %2456 = shalt.err (!%p2453_p11)
}
 0x5be   : > { %s2457_s8 = scalar_lea.hbm %s3166_s23, 512  ;;  %s2461_s15 = scalar_lea.hbm %s3221_s6, 1024 }
 0x5bf   : > { %p2458_p4 = scmp.ne.s32.totalorder %s3166_s23, %s2457_s8  ;;  %p2462_p3 = scmp.lt.u32.totalorder %s3166_s23, %s3221_s6 }
 0x5c0   : > { %p2463_p2 = scmp.lt.u32.totalorder %s2461_s15, %s2457_s8  ;;  %p2465_p8 = scmp.lt.u32.totalorder %s2457_s8, %s3166_s23 }
 0x5c1   : > { %p2459_p13 = pnand %p2458_p4, %p3270_p7 }
 0x5c2   : > { %p2464_p6 = por %p2463_p2, %p2462_p3 }
 0x5c3   : > { %p2460_p12 = pneg %p2459_p13 }
 0x5c4   : > { %p2466_p9 = por %p2465_p8, %p2464_p6 }
 0x5c6   : > { %p2467_p10 = pnand %p2466_p9, %p2460_p12 }
 0x5c8   : > { %2470 = shalt.err (!%p2467_p10)
}
 0x5c9   : > { %2111 = dma.vmem_to_hbm [thread:$0]  (%p3270_p7), %s3168_s19, 512, %s3166_s23, %s1462_s12, %s2535_s26, %s2535_s26, %s2536_s22  }
 0x5ca PF: > { %s3271_s24 = sld [smem:[#allocation19_spill]]  ;;  %s3272_s29 = sld [smem:[#allocation23_spill]] }
 0x5cb   : > { %p3274_p0 = scmp.ge.s32.totalorder %s2521_s27, 2 }
 0x5d0   : > { %s1511_s9 = sand.u32 1, %s3271_s24   ;;  %p3273_p1 = scmp.ne.s32.totalorder %s3272_s29, 0 }
 0x5d1   : > { %s1512_s16 = scalar_lea.sflag [#allocation4], %s1511_s9 }
 0x5d2   : > { %p2133_p5 = pnand %p3274_p0, %p3273_p1 }
 0x5d4   : > { %2500 = dma.done.wait (!%p2133_p5), %s1512_s16, 512  }
 0x5d5   : > { %2502 = vsyncadd (!%p2133_p5), %s1512_s16, 4294966784  ;;  %s1521_s13 = scalar_lea.sflag [#allocation13], %s1511_s9 }
 0x5d6   : > { %2504 = dma.done.wait (!%p2133_p5), %s1521_s13, 512  }
 0x5d7   : > { %2506 = vsyncadd (!%p2133_p5), %s1521_s13, 4294966784  ;;  %s3275_s27 = sld [smem:[#allocation21_spill]]  ;;  %s3276_s21 = sld [smem:[#allocation20_spill]] }
 0x5d8   : > { %s3277_s26 = sld [smem:[#allocation22_spill]]  ;;  %s3278_s24 = smov %s2513_s25 }
 0x5dd   : > { %p28_p7 = scmp.ge.s32.totalorder %s3275_s27, 4   ;;  %s3279_s25 = smov %s3276_s21 }
 0x5df   :  { %30 = sbr.rel (!%p28_p7) target bundleno = 13 (0xd), region = 138 }
 0x5e6   :  { %1526 = vsyncpa [#allocation3], 1 }
 0x5e7   :  { %1528 = vsyncpa [#allocation3 + $0x1], 1 }
 0x5e8   :  { %1529 = vsyncpa [#allocation6], 1 }
 0x5e9   :  { %1531 = vsyncpa [#allocation6 + $0x1], 1 }
 0x5ea   :  { %1532 = vsyncpa [#allocation9], 1 }
 0x5eb   :  { %1533 = vsyncpa [#allocation4], 1 }
 0x5ec   :  { %1535 = vsyncpa [#allocation4 + $0x1], 1 }
 0x5ed   :  { %1536 = vsyncpa [#allocation13], 1 }
 0x5ee   :  { %1538 = vsyncpa [#allocation13 + $0x1], 1 }

</bundles_post_ra>
